<compile_context>
chip_gen: v7x
topology: tpu7x:2x2x1
jax: 0.10.0
libtpu: 0.0.40
codegen_flags: <defaults>
</compile_context>

<pallas_src>
import functools

import jax
import jax.numpy as jnp
from jax.experimental import pallas as pl
from jax.experimental.pallas import tpu as pltpu


def _round_up(x, m):
    return ((x + m - 1) // m) * m


def _logtgn_kernel(zc_ref, w_in_ref, b_in_ref, w_out_ref, b_out_ref, out_ref):
    # zc_ref:    (TILE_N, 2C)  concatenated [z_src | z_dst] tile (pipelined)
    # w_in_ref:  (2C, C) = [W_src^T ; W_dst^T]   (VMEM-resident across grid)
    # b_in_ref:  (1, C)  = b_src + b_dst
    # w_out_ref: (C, O)  = W_final^T
    # b_out_ref: (1, O)  = b_final
    h = jnp.dot(zc_ref[...], w_in_ref[...],
                preferred_element_type=jnp.float32) + b_in_ref[...]
    h = jnp.maximum(h, 0.0)  # ReLU on the VPU
    out = jnp.dot(h, w_out_ref[...],
                  preferred_element_type=jnp.float32) + b_out_ref[...]
    out_ref[...] = out.astype(out_ref.dtype)


def prepare_params(raw):
    """One-time parameter prep (outside the jit'd hot path).

    raw holds PyTorch-style Linear params: w_* as (out_features, in_features),
    b_* as (out_features,). Returns stacked / transposed (in, out) weights.
    """
    c = raw["w_src"].shape[0]
    o = raw["w_final"].shape[0]
    w_in = jnp.concatenate([raw["w_src"].T, raw["w_dst"].T], axis=0)  # (2C, C)
    b_in = (raw["b_src"] + raw["b_dst"]).reshape(1, c)                # (1, C)
    w_out = raw["w_final"].T                                          # (C, O)
    b_out = raw["b_final"].reshape(1, o)                              # (1, O)
    return {"w_in": w_in, "b_in": b_in, "w_out": w_out, "b_out": b_out}


@functools.partial(jax.jit, static_argnames=("tile_n", "min_pallas_rows"))
def logtgn_predictor(z_src, z_dst, prep, *, tile_n=1024, min_pallas_rows=256):
    n, c = z_src.shape
    o = prep["w_out"].shape[1]
    out_dtype = z_src.dtype

    # Fused input projection operand: (N, 2C).
    zc = jnp.concatenate([z_src, z_dst], axis=1)

    # Tiny batches: a single XLA fusion beats pallas_call launch overhead.
    if n < min_pallas_rows:
        h = jnp.maximum(zc @ prep["w_in"] + prep["b_in"], 0.0)
        return (h @ prep["w_out"] + prep["b_out"]).astype(out_dtype)

    # Batch tiling: tile_n multiple of 8, pad N up to a multiple of tile_n.
    # Padded rows compute relu(bias)-style garbage and are sliced off below.
    tile_n = _round_up(max(8, min(tile_n, _round_up(n, 8))), 8)
    n_pad = _round_up(n, tile_n)
    if n_pad != n:
        zc = jnp.pad(zc, ((0, n_pad - n), (0, 0)))

    grid = (n_pad // tile_n,)
    out = pl.pallas_call(
        _logtgn_kernel,
        out_shape=jax.ShapeDtypeStruct((n_pad, o), out_dtype),
        grid=grid,
        in_specs=[
            # Activations: tiled over the batch axis, auto double-buffered.
            pl.BlockSpec((tile_n, 2 * c), lambda i: (i, 0)),
            # Weights / biases: constant index_map -> VMEM-resident, no re-DMA.
            pl.BlockSpec((2 * c, c), lambda i: (0, 0)),
            pl.BlockSpec((1, c), lambda i: (0, 0)),
            pl.BlockSpec((c, o), lambda i: (0, 0)),
            pl.BlockSpec((1, o), lambda i: (0, 0)),
        ],
        # NOTE: O (=16) < 128 keeps the output stores lane-masked; if O stays
        # this small in production, packing 8 rows into a 128-wide slab
        # (layout plumbing only) would make stores lane-dense.
        out_specs=pl.BlockSpec((tile_n, o), lambda i: (i, 0)),
        compiler_params=pltpu.CompilerParams(
            # Batch tiles are independent -> shard across TCs on v7x.
            dimension_semantics=("parallel",),
            # Footprint (~a few hundred KiB at C=32/O=16) sized against v7x's
            # 64 MiB VMEM with plenty of headroom for double-buffering.
            vmem_limit_bytes=32 * 1024 * 1024,
        ),
    )(zc, prep["w_in"], prep["b_in"], prep["w_out"], prep["b_out"])

    return out[:n] if n_pad != n else out


def _init_params(key, in_channels, out_channels, dtype=jnp.float32):
    """Deterministic synthetic init (PyTorch Linear-like uniform bounds)."""
    ks = jax.random.split(key, 6)

    def lin_init(kw, kb, fan_in, fan_out):
        bound = 1.0 / jnp.sqrt(fan_in)
        w = jax.random.uniform(kw, (fan_out, fan_in), dtype, -bound, bound)
        b = jax.random.uniform(kb, (fan_out,), dtype, -bound, bound)
        return w, b

    w_src, b_src = lin_init(ks[0], ks[1], in_channels, in_channels)
    w_dst, b_dst = lin_init(ks[2], ks[3], in_channels, in_channels)
    w_fin, b_fin = lin_init(ks[4], ks[5], in_channels, out_channels)
    return {
        "w_src": w_src, "b_src": b_src,
        "w_dst": w_dst, "b_dst": b_dst,
        "w_final": w_fin, "b_final": b_fin,
    }


def _reference(z_src, z_dst, p):
    h = z_src @ p["w_src"].T + p["b_src"] + z_dst @ p["w_dst"].T + p["b_dst"]
    h = jnp.maximum(h, 0.0)
    return h @ p["w_final"].T + p["b_final"]


if __name__ == "__main__":
    # N deliberately not a multiple of the tile to exercise the padding path.
    N, IN_CH, OUT_CH = 1000, 32, 16
    key = jax.random.PRNGKey(0)
    k_src, k_dst, k_param = jax.random.split(key, 3)

    z_src = jax.random.normal(k_src, (N, IN_CH), jnp.float32)
    z_dst = jax.random.normal(k_dst, (N, IN_CH), jnp.float32)
    raw_params = _init_params(k_param, IN_CH, OUT_CH)
    prep = prepare_params(raw_params)  # one-time prep, outside the hot path

    out = logtgn_predictor(z_src, z_dst, prep, tile_n=256)  # grid of 4 tiles
    out = jax.block_until_ready(out)

    ref = _reference(z_src, z_dst, raw_params)
    assert out.shape == (N, OUT_CH)
    assert jnp.allclose(out, ref, atol=5e-5, rtol=5e-5), float(
        jnp.max(jnp.abs(out - ref)))

    print("KERNEL_OK")
</pallas_src>

<mosaic_0001>
module attributes {stable_mosaic.version = 11 : i64} {
  func.func @_logtgn_kernel(%arg0: i32, %arg1: memref<256x64xf32, #tpu.memory_space<vmem>>, %arg2: memref<64x32xf32, #tpu.memory_space<vmem>>, %arg3: memref<1x32xf32, #tpu.memory_space<vmem>>, %arg4: memref<32x16xf32, #tpu.memory_space<vmem>>, %arg5: memref<1x16xf32, #tpu.memory_space<vmem>>, %arg6: memref<256x16xf32, #tpu.memory_space<vmem>>) attributes {dimension_semantics = [#tpu.dimension_semantics<parallel>], iteration_bounds = array<i64: 4>, scalar_prefetch = 0 : i64, scratch_operands = 0 : i64, tpu.core_type = #tpu.core_type<tc>, window_params = [{transform_indices = @transform_0, window_bounds = array<i64: 256, 64>}, {pipeline_mode = #tpu.pipeline_mode<synchronous>, transform_indices = @transform_1, window_bounds = array<i64: 64, 32>}, {pipeline_mode = #tpu.pipeline_mode<synchronous>, transform_indices = @transform_2, window_bounds = array<i64: 1, 32>}, {pipeline_mode = #tpu.pipeline_mode<synchronous>, transform_indices = @transform_3, window_bounds = array<i64: 32, 16>}, {pipeline_mode = #tpu.pipeline_mode<synchronous>, transform_indices = @transform_4, window_bounds = array<i64: 1, 16>}, {transform_indices = @transform_5, window_bounds = array<i64: 256, 16>}]} {
    %c0 = arith.constant 0 : index
    %c0_0 = arith.constant 0 : index
    %0 = vector.load %arg1[%c0, %c0_0] : memref<256x64xf32, #tpu.memory_space<vmem>>, vector<256x64xf32>
    %c0_1 = arith.constant 0 : index
    %c0_2 = arith.constant 0 : index
    %1 = vector.load %arg2[%c0_1, %c0_2] : memref<64x32xf32, #tpu.memory_space<vmem>>, vector<64x32xf32>
    %cst = arith.constant dense<0.000000e+00> : vector<256x32xf32>
    %2 = tpu.matmul %0, %1, %cst {dimension_numbers = #tpu.dot_dimension_numbers<[1], [0], [0], [1], [0, 0, 1, 1], [], []>} : vector<256x64xf32>, vector<64x32xf32>, vector<256x32xf32> -> vector<256x32xf32>
    %c0_3 = arith.constant 0 : index
    %c0_4 = arith.constant 0 : index
    %3 = vector.load %arg3[%c0_3, %c0_4] : memref<1x32xf32, #tpu.memory_space<vmem>>, vector<1x32xf32>
    %4 = vector.broadcast %3 : vector<1x32xf32> to vector<256x32xf32>
    %5 = arith.addf %2, %4 : vector<256x32xf32>
    %cst_5 = arith.constant 0.000000e+00 : f32
    %6 = vector.broadcast %cst_5 : f32 to vector<256x32xf32>
    %7 = arith.maximumf %5, %6 : vector<256x32xf32>
    %c0_6 = arith.constant 0 : index
    %c0_7 = arith.constant 0 : index
    %8 = vector.load %arg4[%c0_6, %c0_7] : memref<32x16xf32, #tpu.memory_space<vmem>>, vector<32x16xf32>
    %cst_8 = arith.constant dense<0.000000e+00> : vector<256x16xf32>
    %9 = tpu.matmul %7, %8, %cst_8 {dimension_numbers = #tpu.dot_dimension_numbers<[1], [0], [0], [1], [0, 0, 1, 1], [], []>} : vector<256x32xf32>, vector<32x16xf32>, vector<256x16xf32> -> vector<256x16xf32>
    %c0_9 = arith.constant 0 : index
    %c0_10 = arith.constant 0 : index
    %10 = vector.load %arg5[%c0_9, %c0_10] : memref<1x16xf32, #tpu.memory_space<vmem>>, vector<1x16xf32>
    %11 = vector.broadcast %10 : vector<1x16xf32> to vector<256x16xf32>
    %12 = arith.addf %9, %11 : vector<256x16xf32>
    %c0_11 = arith.constant 0 : index
    %c0_12 = arith.constant 0 : index
    %13 = vector.load %arg6[%c0_11, %c0_12] : memref<256x16xf32, #tpu.memory_space<vmem>>, vector<256x16xf32>
    tpu.vector_store %arg6[%c0_11, %c0_12], %12 {strides = array<i32>} : memref<256x16xf32, #tpu.memory_space<vmem>>, vector<256x16xf32>,
    return
  }
  func.func @transform_0(%arg0: i32) -> (i32, i32) {
    %c0_i32 = arith.constant 0 : i32
    %c0_i32_0 = arith.constant 0 : i32
    return %arg0, %c0_i32 : i32, i32
  }
  func.func @transform_1(%arg0: i32) -> (i32, i32) {
    %c0_i32 = arith.constant 0 : i32
    %c0_i32_0 = arith.constant 0 : i32
    %c0_i32_1 = arith.constant 0 : i32
    return %c0_i32, %c0_i32_0 : i32, i32
  }
  func.func @transform_2(%arg0: i32) -> (i32, i32) {
    %c0_i32 = arith.constant 0 : i32
    %c0_i32_0 = arith.constant 0 : i32
    %c0_i32_1 = arith.constant 0 : i32
    return %c0_i32, %c0_i32_0 : i32, i32
  }
  func.func @transform_3(%arg0: i32) -> (i32, i32) {
    %c0_i32 = arith.constant 0 : i32
    %c0_i32_0 = arith.constant 0 : i32
    %c0_i32_1 = arith.constant 0 : i32
    return %c0_i32, %c0_i32_0 : i32, i32
  }
  func.func @transform_4(%arg0: i32) -> (i32, i32) {
    %c0_i32 = arith.constant 0 : i32
    %c0_i32_0 = arith.constant 0 : i32
    %c0_i32_1 = arith.constant 0 : i32
    return %c0_i32, %c0_i32_0 : i32, i32
  }
  func.func @transform_5(%arg0: i32) -> (i32, i32) {
    %c0_i32 = arith.constant 0 : i32
    %c0_i32_0 = arith.constant 0 : i32
    return %arg0, %c0_i32 : i32, i32
  }
}

</mosaic_0001>

<bundles_post_ra>
// kernel: logtgn_predictor.1
= control target key start
LH: loop header
LB: loop body
LE: loop exit
PB: predicated region body
PF: predicated region fallthrough
CT: control target
= control target key end

     0   :  { %s1394_s18 = smov 0   ;;  %s1692_s0 = inlined_call_operand.vmem [shape: f32[1024,64], index: 0, kind: input, shape index: {}]   ;;  %s1693_s1 = inlined_call_operand.vmem [shape: f32[64,32], index: 1, kind: input, shape index: {}]   ;;  %s1694_s2 = inlined_call_operand.vmem [shape: f32[1,32], index: 2, kind: input, shape index: {}]   ;;  %s1695_s3 = inlined_call_operand.vmem [shape: f32[32,16], index: 3, kind: input, shape index: {}]   ;;  %s1696_s4 = inlined_call_operand.vmem [shape: f32[1,16], index: 4, kind: input, shape index: {}]   ;;  %s1697_s5 = inlined_call_operand.vmem [shape: f32[1024,16], index: 5, kind: output, shape index: {}]  }
   0x1 LB: > { %s1051_s19 = sadd.s32 4294967295, %s1362_s18   ;;  %p1055_p0 = scmp.ge.s32.totalorder %s1362_s18, 1  ;;  %s1362_s18 = sphi %s1394_s18, %s15_s18  }
   0x2   : > { %p188_p1 = scmp.lt.s32.totalorder %s1362_s18, 5 }
   0x4   : > { %p189_p2 = pnand %p1055_p0, %p188_p1 }
   0x5   : > { %v260_v0 = vld [vmem:[%s1693_s1] sm:$0xff] (!%p189_p2)  ;;  %v261_v1 = vld [vmem:[%s1693_s1 + $0x8] sm:$0xff] (!%p189_p2)  ;;  %v262_v2 = vld [vmem:[%s1693_s1 + $0x10] sm:$0xff] (!%p189_p2)  ;;  %s1056_s26 = sshll.u32 (!%p189_p2), %s1051_s19, 5  ;;  %vm275_vm0 = vcmask (!%p189_p2), 523264   ;;  %vm640_vm1 = vcmask (!%p189_p2), 261120  }
   0x6   : > { %192 = sbr.rel (%p189_p2) target bundleno = 518 (0x206), region = 40  ;;  %v1324_v3 = vpack.c.bf16 (!%p189_p2), %v261_v1, %v260_v0  ;;  %v263_v4 = vld [vmem:[%s1693_s1 + $0x18] sm:$0xff] (!%p189_p2)  ;;  %p217_p3 = scmp.lt.s32.totalorder (!%p189_p2), %s1056_s26, 127  ;;  %v264_v6 = vld [vmem:[%s1693_s1 + $0x20] sm:$0xff] (!%p189_p2)  ;;  %v265_v7 = vld [vmem:[%s1693_s1 + $0x28] sm:$0xff] (!%p189_p2)  ;;  %vm962_vm2 = vcmask (!%p189_p2), 130048  }
   0x7   : > { %v1328_v5 = vpack.c.bf16 (!%p189_p2), %v263_v4, %v262_v2  ;;  %v629_v8 = vld [vmem:[%s1695_s3] sm:$0xff] (!%p189_p2)  ;;  %v630_v9 = vld [vmem:[%s1695_s3 + $0x8] sm:$0xff] (!%p189_p2)  ;;  %v1332_v11 = vpack.c.bf16 (!%p189_p2), %v265_v7, %v264_v6  ;;  %v266_v12 = vld [vmem:[%s1693_s1 + $0x30] sm:$0xff] (!%p189_p2) }
   0x8   : > { %1325 = vmatprep.subr.bf16.mxu0 (!%p189_p2), %v1324_v3  ;;  %v1340_v10 = vpack.c.bf16 (!%p189_p2), %v630_v9, %v629_v8  ;;  %v267_v13 = vld [vmem:[%s1693_s1 + $0x38] sm:$0xff] (!%p189_p2)  ;;  %v631_v47 = vld [vmem:[%s1695_s3 + $0x10] sm:$0xff] (!%p189_p2)  ;;  %v1515_v50 = vld [vmem:[%s1694_s2] ss:$0 sm:$0xff] (!%p189_p2) }
   0x9   : > { %1327 = vmatpush3.bf16.msra.mxu0 (!%p189_p2), %v1324_v3  ;;  %v1336_v15 = vpack.c.bf16 (!%p189_p2), %v267_v13, %v266_v12  ;;  %v632_v48 = vld [vmem:[%s1695_s3 + $0x18] sm:$0xff] (!%p189_p2) }
   0xa   : > { %1329 = vmatprep.subr.bf16.mxu0 (!%p189_p2), %v1328_v5  ;;  %1341 = vmatprep.subr.bf16.mxu1 (!%p189_p2), %v1340_v10  ;;  %v1344_v49 = vpack.c.bf16 (!%p189_p2), %v632_v48, %v631_v47 }
   0xb   : > { %1343 = vmatpush3.bf16.msra.mxu1 (!%p189_p2), %v1340_v10 }
   0xc   : > { %1345 = vmatprep.subr.bf16.mxu1 (!%p189_p2), %v1344_v49 }
   0xd   : > { %s1699_s26 = smov (!%p217_p3, %s1056_s26), 127  ;;  %1331 = vmatpush3.bf16.msra.mxu0 %v1328_v5 }
   0xe   : > { %s1057_s12 = sshll.u32 %s1699_s26, 3  ;;  %1333 = vmatprep.subr.bf16.mxu0 %v1332_v11 }
   0xf   : > { %s1440_s20 = scalar_lea.vmem %s1692_s0, %s1057_s12  ;;  %1347 = vmatpush3.bf16.msra.mxu1 %v1344_v49  ;;  %s1591_s7 = scalar_lea.vmem %s1697_s5, %s1057_s12 }
  0x10   : > { %v228_v14 = vld [vmem:[%s1440_s20] sm:$0xff]  ;;  %v229_v16 = vld [vmem:[%s1440_s20 + $0x8] sm:$0xff]  ;;  %v230_v17 = vld [vmem:[%s1440_s20 + $0x10] sm:$0xff] }
  0x11   : > { %1220 = vmatprep.mubr.msk.f32.mxu0 %vm275_vm0, %v228_v14  ;;  %1335 = vmatpush3.bf16.msra.mxu0 %v1332_v11  ;;  %v231_v18 = vld [vmem:[%s1440_s20 + $0x18] sm:$0xff]  ;;  %v232_v19 = vld [vmem:[%s1440_s20 + $0x20] sm:$0xff]  ;;  %v233_v20 = vld [vmem:[%s1440_s20 + $0x28] sm:$0xff] }
  0x12   : > { %1337 = vmatprep.subr.bf16.mxu0 %v1336_v15  ;;  %v234_v21 = vld [vmem:[%s1440_s20 + $0x30] sm:$0xff]  ;;  %v235_v22 = vld [vmem:[%s1440_s20 + $0x38] sm:$0xff]  ;;  %v236_v23 = vld [vmem:[%s1440_s20 + $0x40] sm:$0xff] }
  0x13   : > { %v237_v24 = vld [vmem:[%s1440_s20 + $0x48] sm:$0xff]  ;;  %v238_v25 = vld [vmem:[%s1440_s20 + $0x50] sm:$0xff]  ;;  %v239_v26 = vld [vmem:[%s1440_s20 + $0x58] sm:$0xff] }
  0x14   : > { %v240_v27 = vld [vmem:[%s1440_s20 + $0x60] sm:$0xff]  ;;  %v241_v28 = vld [vmem:[%s1440_s20 + $0x68] sm:$0xff]  ;;  %v242_v29 = vld [vmem:[%s1440_s20 + $0x70] sm:$0xff] }
  0x15   : > { %1339 = vmatpush3.bf16.msra.mxu0 %v1336_v15  ;;  %v243_v30 = vld [vmem:[%s1440_s20 + $0x78] sm:$0xff]  ;;  %v244_v31 = vld [vmem:[%s1440_s20 + $0x80] sm:$0xff]  ;;  %v245_v32 = vld [vmem:[%s1440_s20 + $0x88] sm:$0xff] }
  0x16   : > { %v246_v33 = vld [vmem:[%s1440_s20 + $0x90] sm:$0xff]  ;;  %v247_v34 = vld [vmem:[%s1440_s20 + $0x98] sm:$0xff]  ;;  %v248_v35 = vld [vmem:[%s1440_s20 + $0xa0] sm:$0xff] }
  0x17   : > { %v249_v36 = vld [vmem:[%s1440_s20 + $0xa8] sm:$0xff]  ;;  %v250_v37 = vld [vmem:[%s1440_s20 + $0xb0] sm:$0xff]  ;;  %v251_v38 = vld [vmem:[%s1440_s20 + $0xb8] sm:$0xff] }
  0x18   : > { %1221 = vmatmul.mubr.msk.f32.vlgmr.msra.gmra.mrb[0].mxu0 %vm275_vm0, %v229_v16  ;;  %v252_v39 = vld [vmem:[%s1440_s20 + $0xc0] sm:$0xff]  ;;  %v253_v40 = vld [vmem:[%s1440_s20 + $0xc8] sm:$0xff]  ;;  %v254_v41 = vld [vmem:[%s1440_s20 + $0xd0] sm:$0xff] }
  0x19   : > { %1223 = vmatprep.mubr.msk.f32.mxu0 %vm275_vm0, %v230_v17  ;;  %v255_v42 = vld [vmem:[%s1440_s20 + $0xd8] sm:$0xff]  ;;  %v256_v43 = vld [vmem:[%s1440_s20 + $0xe0] sm:$0xff]  ;;  %v257_v44 = vld [vmem:[%s1440_s20 + $0xe8] sm:$0xff] }
  0x1a   : > { %v258_v45 = vld [vmem:[%s1440_s20 + $0xf0] sm:$0xff]  ;;  %v259_v46 = vld [vmem:[%s1440_s20 + $0xf8] sm:$0xff] }
  0x1c   : > { %1224 = vmatmul.mubr.msk.f32.gmra.mrb[2].mxu0 %vm275_vm0, %v231_v18 }
  0x1d   : > { %1226 = vmatprep.mubr.msk.f32.mxu0 %vm275_vm0, %v232_v19 }
  0x20   : > { %1227 = vmatmul.mubr.msk.f32.gmra.mrb[4].mxu0 %vm275_vm0, %v233_v20 }
  0x21   : > { %1229 = vmatprep.mubr.msk.f32.mxu0 %vm275_vm0, %v234_v21 }
  0x24   : > { %1230 = vmatmul.mubr.msk.f32.gmra.mrb[6].mxu0 %vm275_vm0, %v235_v22 }
  0x25   : > { %1232 = vmatprep.mubr.msk.f32.mxu0 %vm275_vm0, %v236_v23 }
  0x28   : > { %1233 = vmatmul.mubr.msk.f32.gmra.mrb[8].mxu0 %vm275_vm0, %v237_v24 }
  0x29   : > { %1235 = vmatprep.mubr.msk.f32.mxu0 %vm275_vm0, %v238_v25 }
  0x2c   : > { %1236 = vmatmul.mubr.msk.f32.gmra.mrb[10].mxu0 %vm275_vm0, %v239_v26 }
  0x2d   : > { %1238 = vmatprep.mubr.msk.f32.mxu0 %vm275_vm0, %v240_v27 }
  0x30   : > { %1239 = vmatmul.mubr.msk.f32.gmra.mrb[12].mxu0 %vm275_vm0, %v241_v28 }
  0x31   : > { %1241 = vmatprep.mubr.msk.f32.mxu0 %vm275_vm0, %v242_v29 }
  0x34   : > { %1242 = vmatmul.mubr.msk.f32.gmra.mrb[14].mxu0 %vm275_vm0, %v243_v30 }
  0x35   : > { %1244 = vmatprep.mubr.msk.f32.mxu0 %vm275_vm0, %v244_v31 }
  0x38   : > { %1245 = vmatmul.mubr.msk.f32.gmra.mrb[16].mxu0 %vm275_vm0, %v245_v32 }
  0x39   : > { %1247 = vmatprep.mubr.msk.f32.mxu0 %vm275_vm0, %v246_v33 }
  0x3c   : > { %1248 = vmatmul.mubr.msk.f32.gmra.mrb[18].mxu0 %vm275_vm0, %v247_v34 }
  0x3d   : > { %1250 = vmatprep.mubr.msk.f32.mxu0 %vm275_vm0, %v248_v35 }
  0x40   : > { %1251 = vmatmul.mubr.msk.f32.gmra.mrb[20].mxu0 %vm275_vm0, %v249_v36 }
  0x41   : > { %1253 = vmatprep.mubr.msk.f32.mxu0 %vm275_vm0, %v250_v37 }
  0x44   : > { %1254 = vmatmul.mubr.msk.f32.gmra.mrb[22].mxu0 %vm275_vm0, %v251_v38 }
  0x45   : > { %1256 = vmatprep.mubr.msk.f32.mxu0 %vm275_vm0, %v252_v39 }
  0x48   : > { %1257 = vmatmul.mubr.msk.f32.gmra.mrb[24].mxu0 %vm275_vm0, %v253_v40 }
  0x49   : > { %1259 = vmatprep.mubr.msk.f32.mxu0 %vm275_vm0, %v254_v41 }
  0x4c   : > { %1260 = vmatmul.mubr.msk.f32.gmra.mrb[26].mxu0 %vm275_vm0, %v255_v42 }
  0x4d   : > { %1262 = vmatprep.mubr.msk.f32.mxu0 %vm275_vm0, %v256_v43 }
  0x50   : > { %1263 = vmatmul.mubr.msk.f32.gmra.mrb[28].mxu0 %vm275_vm0, %v257_v44 }
  0x51   : > { %1265 = vmatprep.mubr.msk.f32.mxu0 %vm275_vm0, %v258_v45 }
  0x54   : > { %1266 = vmatmul.mubr.msk.f32.gmra.mrb[30].mxu0 %vm275_vm0, %v259_v46 }
  0xeb   : > { %v1222_v51 = vpop.f32.mrb[0].mxu0 }
  0xec   : > { %v444_v52 = vadd.f32 %v1222_v51, %v1515_v50  ;;  %v438_v53 = vpop.f32.mrb[1].mxu0 }
  0xed   : > { %v439_v54 = vadd.f32 %v1515_v50, %v438_v53 }
  0xee   : > { %v598_v57 = vmax.f32 %v444_v52, 0.0 }
  0xef   : > { %v597_v55 = vmax.f32 %v439_v54, 0.0  ;;  %v1225_v56 = vpop.f32.mrb[2].mxu0 }
  0xf0   : > { %v454_v58 = vadd.f32 %v1225_v56, %v1515_v50  ;;  %v448_v59 = vpop.f32.mrb[3].mxu0 }
  0xf1   : > { %v449_v60 = vadd.f32 %v1515_v50, %v448_v59  ;;  %1276 = vmatprep.mubr.msk.f32.mxu1 %vm640_vm1, %v597_v55 }
  0xf2   : > { %1277 = vmatmul.mubr.msk.f32.vlgmr.msra.gmra.mrb[0].mxu1 %vm640_vm1, %v598_v57  ;;  %v600_v63 = vmax.f32 %v454_v58, 0.0 }
  0xf3   : > { %v599_v61 = vmax.f32 %v449_v60, 0.0  ;;  %v1228_v62 = vpop.f32.mrb[4].mxu0 }
  0xf4   : > { %v464_v0 = vadd.f32 %v1228_v62, %v1515_v50  ;;  %v458_v1 = vpop.f32.mrb[5].mxu0 }
  0xf5   : > { %v459_v2 = vadd.f32 %v1515_v50, %v458_v1  ;;  %1279 = vmatprep.mubr.msk.f32.mxu1 %vm640_vm1, %v599_v61 }
  0xf6   : > { %1280 = vmatmul.mubr.msk.f32.gmra.mrb[2].mxu1 %vm640_vm1, %v600_v63  ;;  %v602_v5 = vmax.f32 %v464_v0, 0.0 }
  0xf7   : > { %v601_v3 = vmax.f32 %v459_v2, 0.0  ;;  %v1231_v4 = vpop.f32.mrb[6].mxu0 }
  0xf8   : > { %v474_v6 = vadd.f32 %v1231_v4, %v1515_v50  ;;  %v468_v7 = vpop.f32.mrb[7].mxu0 }
  0xf9   : > { %v469_v8 = vadd.f32 %v1515_v50, %v468_v7  ;;  %1282 = vmatprep.mubr.msk.f32.mxu1 %vm640_vm1, %v601_v3 }
  0xfa   : > { %1283 = vmatmul.mubr.msk.f32.gmra.mrb[4].mxu1 %vm640_vm1, %v602_v5  ;;  %v604_v11 = vmax.f32 %v474_v6, 0.0 }
  0xfb   : > { %v603_v9 = vmax.f32 %v469_v8, 0.0  ;;  %v1234_v10 = vpop.f32.mrb[8].mxu0 }
  0xfc   : > { %v484_v12 = vadd.f32 %v1234_v10, %v1515_v50  ;;  %v478_v13 = vpop.f32.mrb[9].mxu0 }
  0xfd   : > { %v479_v14 = vadd.f32 %v1515_v50, %v478_v13  ;;  %1285 = vmatprep.mubr.msk.f32.mxu1 %vm640_vm1, %v603_v9 }
  0xfe   : > { %1286 = vmatmul.mubr.msk.f32.gmra.mrb[6].mxu1 %vm640_vm1, %v604_v11  ;;  %v606_v17 = vmax.f32 %v484_v12, 0.0 }
  0xff   : > { %v605_v15 = vmax.f32 %v479_v14, 0.0  ;;  %v1237_v16 = vpop.f32.mrb[10].mxu0 }
 0x100   : > { %v494_v18 = vadd.f32 %v1237_v16, %v1515_v50  ;;  %v488_v19 = vpop.f32.mrb[11].mxu0 }
 0x101   : > { %v489_v20 = vadd.f32 %v1515_v50, %v488_v19  ;;  %1288 = vmatprep.mubr.msk.f32.mxu1 %vm640_vm1, %v605_v15 }
 0x102   : > { %1289 = vmatmul.mubr.msk.f32.gmra.mrb[8].mxu1 %vm640_vm1, %v606_v17  ;;  %v608_v23 = vmax.f32 %v494_v18, 0.0 }
 0x103   : > { %v607_v21 = vmax.f32 %v489_v20, 0.0  ;;  %v1240_v22 = vpop.f32.mrb[12].mxu0  ;;  %v1584_v20 = vld [vmem:[%s1696_s4] ss:$0 sm:$0xff] }
 0x104   : > { %v504_v24 = vadd.f32 %v1240_v22, %v1515_v50  ;;  %v498_v25 = vpop.f32.mrb[13].mxu0 }
 0x105   : > { %v499_v26 = vadd.f32 %v1515_v50, %v498_v25  ;;  %1291 = vmatprep.mubr.msk.f32.mxu1 %vm640_vm1, %v607_v21 }
 0x106   : > { %1292 = vmatmul.mubr.msk.f32.gmra.mrb[10].mxu1 %vm640_vm1, %v608_v23  ;;  %v610_v29 = vmax.f32 %v504_v24, 0.0 }
 0x107   : > { %v609_v27 = vmax.f32 %v499_v26, 0.0  ;;  %v1243_v28 = vpop.f32.mrb[14].mxu0 }
 0x108   : > { %v514_v30 = vadd.f32 %v1243_v28, %v1515_v50  ;;  %v508_v31 = vpop.f32.mrb[15].mxu0 }
 0x109   : > { %v509_v32 = vadd.f32 %v1515_v50, %v508_v31  ;;  %1294 = vmatprep.mubr.msk.f32.mxu1 %vm640_vm1, %v609_v27 }
 0x10a   : > { %1295 = vmatmul.mubr.msk.f32.gmra.mrb[12].mxu1 %vm640_vm1, %v610_v29  ;;  %v612_v35 = vmax.f32 %v514_v30, 0.0 }
 0x10b   : > { %v611_v33 = vmax.f32 %v509_v32, 0.0  ;;  %v1246_v34 = vpop.f32.mrb[16].mxu0 }
 0x10c   : > { %v524_v36 = vadd.f32 %v1246_v34, %v1515_v50  ;;  %v518_v37 = vpop.f32.mrb[17].mxu0 }
 0x10d   : > { %v519_v38 = vadd.f32 %v1515_v50, %v518_v37  ;;  %1297 = vmatprep.mubr.msk.f32.mxu1 %vm640_vm1, %v611_v33 }
 0x10e   : > { %1298 = vmatmul.mubr.msk.f32.gmra.mrb[14].mxu1 %vm640_vm1, %v612_v35  ;;  %v614_v41 = vmax.f32 %v524_v36, 0.0 }
 0x10f   : > { %v613_v39 = vmax.f32 %v519_v38, 0.0  ;;  %v1249_v40 = vpop.f32.mrb[18].mxu0 }
 0x110   : > { %v534_v42 = vadd.f32 %v1249_v40, %v1515_v50  ;;  %v528_v43 = vpop.f32.mrb[19].mxu0 }
 0x111   : > { %v529_v44 = vadd.f32 %v1515_v50, %v528_v43  ;;  %1300 = vmatprep.mubr.msk.f32.mxu1 %vm640_vm1, %v613_v39 }
 0x112   : > { %1301 = vmatmul.mubr.msk.f32.gmra.mrb[16].mxu1 %vm640_vm1, %v614_v41  ;;  %v616_v47 = vmax.f32 %v534_v42, 0.0 }
 0x113   : > { %v615_v45 = vmax.f32 %v529_v44, 0.0  ;;  %v1252_v46 = vpop.f32.mrb[20].mxu0 }
 0x114   : > { %v544_v48 = vadd.f32 %v1252_v46, %v1515_v50  ;;  %v538_v49 = vpop.f32.mrb[21].mxu0 }
 0x115   : > { %v539_v51 = vadd.f32 %v1515_v50, %v538_v49  ;;  %1303 = vmatprep.mubr.msk.f32.mxu1 %vm640_vm1, %v615_v45 }
 0x116   : > { %1304 = vmatmul.mubr.msk.f32.gmra.mrb[18].mxu1 %vm640_vm1, %v616_v47  ;;  %v618_v54 = vmax.f32 %v544_v48, 0.0 }
 0x117   : > { %v617_v52 = vmax.f32 %v539_v51, 0.0  ;;  %v1255_v53 = vpop.f32.mrb[22].mxu0 }
 0x118   : > { %v554_v55 = vadd.f32 %v1255_v53, %v1515_v50  ;;  %v548_v56 = vpop.f32.mrb[23].mxu0 }
 0x119   : > { %v549_v57 = vadd.f32 %v1515_v50, %v548_v56  ;;  %1306 = vmatprep.mubr.msk.f32.mxu1 %vm640_vm1, %v617_v52 }
 0x11a   : > { %1307 = vmatmul.mubr.msk.f32.gmra.mrb[20].mxu1 %vm640_vm1, %v618_v54  ;;  %v620_v60 = vmax.f32 %v554_v55, 0.0 }
 0x11b   : > { %v619_v58 = vmax.f32 %v549_v57, 0.0  ;;  %v1258_v59 = vpop.f32.mrb[24].mxu0 }
 0x11c   : > { %v564_v61 = vadd.f32 %v1258_v59, %v1515_v50  ;;  %v558_v62 = vpop.f32.mrb[25].mxu0 }
 0x11d   : > { %v559_v63 = vadd.f32 %v1515_v50, %v558_v62  ;;  %1309 = vmatprep.mubr.msk.f32.mxu1 %vm640_vm1, %v619_v58 }
 0x11e   : > { %1310 = vmatmul.mubr.msk.f32.gmra.mrb[22].mxu1 %vm640_vm1, %v620_v60  ;;  %v622_v2 = vmax.f32 %v564_v61, 0.0 }
 0x11f   : > { %v621_v0 = vmax.f32 %v559_v63, 0.0  ;;  %v1261_v1 = vpop.f32.mrb[26].mxu0 }
 0x120   : > { %v574_v3 = vadd.f32 %v1261_v1, %v1515_v50  ;;  %v568_v4 = vpop.f32.mrb[27].mxu0 }
 0x121   : > { %v569_v5 = vadd.f32 %v1515_v50, %v568_v4  ;;  %1312 = vmatprep.mubr.msk.f32.mxu1 %vm640_vm1, %v621_v0 }
 0x122   : > { %1313 = vmatmul.mubr.msk.f32.gmra.mrb[24].mxu1 %vm640_vm1, %v622_v2  ;;  %v624_v8 = vmax.f32 %v574_v3, 0.0 }
 0x123   : > { %v623_v6 = vmax.f32 %v569_v5, 0.0  ;;  %v1264_v7 = vpop.f32.mrb[28].mxu0 }
 0x124   : > { %v584_v9 = vadd.f32 %v1264_v7, %v1515_v50  ;;  %v578_v10 = vpop.f32.mrb[29].mxu0 }
 0x125   : > { %v579_v11 = vadd.f32 %v1515_v50, %v578_v10  ;;  %1315 = vmatprep.mubr.msk.f32.mxu1 %vm640_vm1, %v623_v6 }
 0x126   : > { %1316 = vmatmul.mubr.msk.f32.gmra.mrb[26].mxu1 %vm640_vm1, %v624_v8  ;;  %v626_v14 = vmax.f32 %v584_v9, 0.0 }
 0x127   : > { %v625_v12 = vmax.f32 %v579_v11, 0.0  ;;  %v1267_v13 = vpop.f32.mrb[30].mxu0 }
 0x128   : > { %v594_v15 = vadd.f32 %v1267_v13, %v1515_v50  ;;  %v588_v16 = vpop.f32.mrb[31].mxu0 }
 0x129   : > { %v589_v17 = vadd.f32 %v1515_v50, %v588_v16  ;;  %1318 = vmatprep.mubr.msk.f32.mxu1 %vm640_vm1, %v625_v12 }
 0x12a   : > { %1319 = vmatmul.mubr.msk.f32.gmra.mrb[28].mxu1 %vm640_vm1, %v626_v14  ;;  %v628_v19 = vmax.f32 %v594_v15, 0.0 }
 0x12b   : > { %v627_v18 = vmax.f32 %v589_v17, 0.0 }
 0x12d   : > { %1321 = vmatprep.mubr.msk.f32.mxu1 %vm640_vm1, %v627_v18 }
 0x12e   : > { %1322 = vmatmul.mubr.msk.f32.gmra.mrb[30].mxu1 %vm640_vm1, %v628_v19 }
 0x1c5   : > { %v1278_v50 = vpop.f32.mrb[0].mxu1 }
 0x1c6   : > { %v809_v21 = vadd.f32 %v1278_v50, %v1584_v20  ;;  %v803_v22 = vpop.f32.mrb[1].mxu1 }
 0x1c7   : > { %v804_v23 = vadd.f32 %v1584_v20, %v803_v22 }
 0x1c8   : > { %964 = vst.msk [vmem:[%s1591_s7 + $0x8] sm:$0xff] %vm962_vm2, %v809_v21 }
 0x1c9   : > { %963 = vst.msk [vmem:[%s1591_s7] sm:$0xff] %vm962_vm2, %v804_v23  ;;  %v1281_v24 = vpop.f32.mrb[2].mxu1 }
 0x1ca   : > { %v819_v25 = vadd.f32 %v1281_v24, %v1584_v20  ;;  %v813_v26 = vpop.f32.mrb[3].mxu1 }
 0x1cb   : > { %v814_v27 = vadd.f32 %v1584_v20, %v813_v26 }
 0x1cc   : > { %966 = vst.msk [vmem:[%s1591_s7 + $0x18] sm:$0xff] %vm962_vm2, %v819_v25 }
 0x1cd   : > { %965 = vst.msk [vmem:[%s1591_s7 + $0x10] sm:$0xff] %vm962_vm2, %v814_v27  ;;  %v1284_v28 = vpop.f32.mrb[4].mxu1 }
 0x1ce   : > { %v829_v29 = vadd.f32 %v1284_v28, %v1584_v20  ;;  %v823_v30 = vpop.f32.mrb[5].mxu1 }
 0x1cf   : > { %v824_v31 = vadd.f32 %v1584_v20, %v823_v30 }
 0x1d0   : > { %968 = vst.msk [vmem:[%s1591_s7 + $0x28] sm:$0xff] %vm962_vm2, %v829_v29 }
 0x1d1   : > { %967 = vst.msk [vmem:[%s1591_s7 + $0x20] sm:$0xff] %vm962_vm2, %v824_v31  ;;  %v1287_v32 = vpop.f32.mrb[6].mxu1 }
 0x1d2   : > { %v839_v33 = vadd.f32 %v1287_v32, %v1584_v20  ;;  %v833_v34 = vpop.f32.mrb[7].mxu1 }
 0x1d3   : > { %v834_v35 = vadd.f32 %v1584_v20, %v833_v34 }
 0x1d4   : > { %970 = vst.msk [vmem:[%s1591_s7 + $0x38] sm:$0xff] %vm962_vm2, %v839_v33 }
 0x1d5   : > { %969 = vst.msk [vmem:[%s1591_s7 + $0x30] sm:$0xff] %vm962_vm2, %v834_v35  ;;  %v1290_v36 = vpop.f32.mrb[8].mxu1 }
 0x1d6   : > { %v849_v37 = vadd.f32 %v1290_v36, %v1584_v20  ;;  %v843_v38 = vpop.f32.mrb[9].mxu1 }
 0x1d7   : > { %v844_v39 = vadd.f32 %v1584_v20, %v843_v38 }
 0x1d8   : > { %972 = vst.msk [vmem:[%s1591_s7 + $0x48] sm:$0xff] %vm962_vm2, %v849_v37 }
 0x1d9   : > { %971 = vst.msk [vmem:[%s1591_s7 + $0x40] sm:$0xff] %vm962_vm2, %v844_v39  ;;  %v1293_v40 = vpop.f32.mrb[10].mxu1 }
 0x1da   : > { %v859_v41 = vadd.f32 %v1293_v40, %v1584_v20  ;;  %v853_v42 = vpop.f32.mrb[11].mxu1 }
 0x1db   : > { %v854_v43 = vadd.f32 %v1584_v20, %v853_v42 }
 0x1dc   : > { %974 = vst.msk [vmem:[%s1591_s7 + $0x58] sm:$0xff] %vm962_vm2, %v859_v41 }
 0x1dd   : > { %973 = vst.msk [vmem:[%s1591_s7 + $0x50] sm:$0xff] %vm962_vm2, %v854_v43  ;;  %v1296_v44 = vpop.f32.mrb[12].mxu1 }
 0x1de   : > { %v869_v45 = vadd.f32 %v1296_v44, %v1584_v20  ;;  %v863_v46 = vpop.f32.mrb[13].mxu1 }
 0x1df   : > { %v864_v47 = vadd.f32 %v1584_v20, %v863_v46 }
 0x1e0   : > { %976 = vst.msk [vmem:[%s1591_s7 + $0x68] sm:$0xff] %vm962_vm2, %v869_v45 }
 0x1e1   : > { %975 = vst.msk [vmem:[%s1591_s7 + $0x60] sm:$0xff] %vm962_vm2, %v864_v47  ;;  %v1299_v48 = vpop.f32.mrb[14].mxu1 }
 0x1e2   : > { %v879_v49 = vadd.f32 %v1299_v48, %v1584_v20  ;;  %v873_v51 = vpop.f32.mrb[15].mxu1 }
 0x1e3   : > { %v874_v52 = vadd.f32 %v1584_v20, %v873_v51 }
 0x1e4   : > { %978 = vst.msk [vmem:[%s1591_s7 + $0x78] sm:$0xff] %vm962_vm2, %v879_v49 }
 0x1e5   : > { %977 = vst.msk [vmem:[%s1591_s7 + $0x70] sm:$0xff] %vm962_vm2, %v874_v52  ;;  %v1302_v53 = vpop.f32.mrb[16].mxu1 }
 0x1e6   : > { %v889_v54 = vadd.f32 %v1302_v53, %v1584_v20  ;;  %v883_v55 = vpop.f32.mrb[17].mxu1 }
 0x1e7   : > { %v884_v56 = vadd.f32 %v1584_v20, %v883_v55 }
 0x1e8   : > { %980 = vst.msk [vmem:[%s1591_s7 + $0x88] sm:$0xff] %vm962_vm2, %v889_v54 }
 0x1e9   : > { %979 = vst.msk [vmem:[%s1591_s7 + $0x80] sm:$0xff] %vm962_vm2, %v884_v56  ;;  %v1305_v57 = vpop.f32.mrb[18].mxu1 }
 0x1ea   : > { %v899_v58 = vadd.f32 %v1305_v57, %v1584_v20  ;;  %v893_v59 = vpop.f32.mrb[19].mxu1 }
 0x1eb   : > { %v894_v60 = vadd.f32 %v1584_v20, %v893_v59 }
 0x1ec   : > { %982 = vst.msk [vmem:[%s1591_s7 + $0x98] sm:$0xff] %vm962_vm2, %v899_v58 }
 0x1ed   : > { %981 = vst.msk [vmem:[%s1591_s7 + $0x90] sm:$0xff] %vm962_vm2, %v894_v60  ;;  %v1308_v61 = vpop.f32.mrb[20].mxu1 }
 0x1ee   : > { %v909_v62 = vadd.f32 %v1308_v61, %v1584_v20  ;;  %v903_v63 = vpop.f32.mrb[21].mxu1 }
 0x1ef   : > { %v904_v0 = vadd.f32 %v1584_v20, %v903_v63 }
 0x1f0   : > { %984 = vst.msk [vmem:[%s1591_s7 + $0xa8] sm:$0xff] %vm962_vm2, %v909_v62 }
 0x1f1   : > { %983 = vst.msk [vmem:[%s1591_s7 + $0xa0] sm:$0xff] %vm962_vm2, %v904_v0  ;;  %v1311_v1 = vpop.f32.mrb[22].mxu1 }
 0x1f2   : > { %v919_v2 = vadd.f32 %v1311_v1, %v1584_v20  ;;  %v913_v3 = vpop.f32.mrb[23].mxu1 }
 0x1f3   : > { %v914_v4 = vadd.f32 %v1584_v20, %v913_v3 }
 0x1f4   : > { %986 = vst.msk [vmem:[%s1591_s7 + $0xb8] sm:$0xff] %vm962_vm2, %v919_v2 }
 0x1f5   : > { %985 = vst.msk [vmem:[%s1591_s7 + $0xb0] sm:$0xff] %vm962_vm2, %v914_v4  ;;  %v1314_v5 = vpop.f32.mrb[24].mxu1 }
 0x1f6   : > { %v929_v6 = vadd.f32 %v1314_v5, %v1584_v20  ;;  %v923_v7 = vpop.f32.mrb[25].mxu1 }
 0x1f7   : > { %v924_v8 = vadd.f32 %v1584_v20, %v923_v7 }
 0x1f8   : > { %988 = vst.msk [vmem:[%s1591_s7 + $0xc8] sm:$0xff] %vm962_vm2, %v929_v6 }
 0x1f9   : > { %987 = vst.msk [vmem:[%s1591_s7 + $0xc0] sm:$0xff] %vm962_vm2, %v924_v8  ;;  %v1317_v9 = vpop.f32.mrb[26].mxu1 }
 0x1fa   : > { %v939_v10 = vadd.f32 %v1317_v9, %v1584_v20  ;;  %v933_v11 = vpop.f32.mrb[27].mxu1 }
 0x1fb   : > { %v934_v12 = vadd.f32 %v1584_v20, %v933_v11 }
 0x1fc   : > { %990 = vst.msk [vmem:[%s1591_s7 + $0xd8] sm:$0xff] %vm962_vm2, %v939_v10 }
 0x1fd   : > { %989 = vst.msk [vmem:[%s1591_s7 + $0xd0] sm:$0xff] %vm962_vm2, %v934_v12  ;;  %v1320_v13 = vpop.f32.mrb[28].mxu1 }
 0x1fe   : > { %v949_v14 = vadd.f32 %v1320_v13, %v1584_v20  ;;  %v943_v15 = vpop.f32.mrb[29].mxu1 }
 0x1ff   : > { %v944_v16 = vadd.f32 %v1584_v20, %v943_v15 }
 0x200   : > { %992 = vst.msk [vmem:[%s1591_s7 + $0xe8] sm:$0xff] %vm962_vm2, %v949_v14 }
 0x201   : > { %991 = vst.msk [vmem:[%s1591_s7 + $0xe0] sm:$0xff] %vm962_vm2, %v944_v16  ;;  %v1323_v17 = vpop.f32.mrb[30].mxu1 }
 0x202   : > { %v959_v18 = vadd.f32 %v1323_v17, %v1584_v20  ;;  %v953_v19 = vpop.f32.mrb[31].mxu1 }
 0x203   : > { %v954_v50 = vadd.f32 %v1584_v20, %v953_v19 }
 0x204   : > { %994 = vst.msk [vmem:[%s1591_s7 + $0xf8] sm:$0xff] %vm962_vm2, %v959_v18 }
 0x205   : > { %993 = vst.msk [vmem:[%s1591_s7 + $0xf0] sm:$0xff] %vm962_vm2, %v954_v50 }
 0x206 PF: > { %s15_s18 = sadd.s32 1, %s1362_s18  }
 0x207   : > { %p12_p4 = scmp.ge.s32.totalorder %s15_s18, 6  }
 0x209   :  { %14 = sbr.rel (!%p12_p4) target bundleno = 1 (0x1), region = 70 }

</bundles_post_ra>
